<compile_context>
chip_gen: v7x
topology: tpu7x:2x2x1
jax: 0.10.0
libtpu: 0.0.40
codegen_flags: <defaults>
</compile_context>

<pallas_src>
import functools

import jax
import jax.numpy as jnp
from jax import lax
from jax.experimental import pallas as pl
from jax.experimental.pallas import tpu as pltpu


def _round_up(x, m):
    return (x + m - 1) // m * m


def _vmem_capacity_bytes():
    """Physical VMEM of the local TPU; conservative fallback if unknown."""
    try:
        info = pltpu.get_tpu_info()
        cap = getattr(info, "vmem_capacity_bytes", None)
        if cap:
            return int(cap)
    except Exception:
        pass
    return 64 * 1024 * 1024  # assume the smallest (v7x-like) part


def _budgets():
    """(double-buffered x-tile budget, vmem_limit_bytes), generation aware."""
    cap = _vmem_capacity_bytes()
    if cap >= 96 * 1024 * 1024:                     # v5e / v6e: 128 MiB VMEM
        return 24 * 1024 * 1024, 100 * 1024 * 1024
    return 12 * 1024 * 1024, 48 * 1024 * 1024       # v7x (64 MiB) / unknown


# --------------------------------------------------------------------------
# Kernel 1: whole sequence resident in VMEM (typical voiceMOS shapes).
# --------------------------------------------------------------------------
def _sap_single_pass_kernel(w_ref, x_ref, out_ref):
    # w_ref  : (1, 1, H)   f32
    # x_ref  : (NB, T, H)  native dtype (bf16 / f32)
    # out_ref: (NB, H)     native dtype
    x = x_ref[...].astype(jnp.float32)                   # upcast after the DMA
    w = w_ref[...]                                       # (1, 1, H)

    logits = jnp.sum(x * w, axis=-1)                     # (NB, T) lane reduce
    m = jnp.max(logits, axis=-1, keepdims=True)          # (NB, 1)
    p = jnp.exp(logits - m)                              # (NB, T)
    denom = jnp.sum(p, axis=-1, keepdims=True)           # (NB, 1)

    # Time contraction on the MXU: (NB, 1, T) x (NB, T, H) -> (NB, 1, H).
    ws = lax.dot_general(
        p[:, None, :], x,
        dimension_numbers=(((2,), (1,)), ((0,), (0,))),
        preferred_element_type=jnp.float32,
        precision=lax.Precision.HIGHEST,
    )[:, 0, :]                                           # (NB, H)

    out_ref[...] = (ws / denom).astype(out_ref.dtype)    # exact divide


# --------------------------------------------------------------------------
# Kernel 2: T-tiled online softmax for long sequences (flash-style).
# --------------------------------------------------------------------------
def _sap_tiled_kernel(w_ref, x_ref, out_ref, m_sc, l_sc, acc_sc, *,
                      seq_len, t_block):
    t = pl.program_id(1)

    @pl.when(t == 0)
    def _init():
        m_sc[...] = jnp.full_like(m_sc, -jnp.inf)
        l_sc[...] = jnp.zeros_like(l_sc)
        acc_sc[...] = jnp.zeros_like(acc_sc)

    x = x_ref[...].astype(jnp.float32)                   # (NB, TB, H)
    w = w_ref[...]                                       # (1, 1, H)
    logits = jnp.sum(x * w, axis=-1)                     # (NB, TB)

    if seq_len % t_block != 0:
        # Mask the ragged T tail: the OOB part of the last block is undefined
        # and must not leak into the row-wise softmax / weighted sum.
        nb, tb = logits.shape
        col = lax.broadcasted_iota(jnp.int32, (nb, tb), 1)
        valid = (t * tb + col) < seq_len
        logits = jnp.where(valid, logits, -jnp.inf)
        x = jnp.where(valid[:, :, None], x, 0.0)

    m_prev = m_sc[...]                                              # (NB, 1)
    m_new = jnp.maximum(m_prev, jnp.max(logits, axis=-1, keepdims=True))
    alpha = jnp.exp(m_prev - m_new)                                 # (NB, 1)
    p = jnp.exp(logits - m_new)                                     # (NB, TB)

    l_sc[...] = alpha * l_sc[...] + jnp.sum(p, axis=-1, keepdims=True)
    ws = lax.dot_general(
        p[:, None, :], x,
        dimension_numbers=(((2,), (1,)), ((0,), (0,))),
        preferred_element_type=jnp.float32,
        precision=lax.Precision.HIGHEST,
    )[:, 0, :]                                                      # (NB, H)
    acc_sc[...] = alpha * acc_sc[...] + ws
    m_sc[...] = m_new

    @pl.when(t == pl.num_programs(1) - 1)
    def _finalize():
        out_ref[...] = (acc_sc[...] / l_sc[...]).astype(out_ref.dtype)


# --------------------------------------------------------------------------
# Wrapper
# --------------------------------------------------------------------------
def self_attention_pooling(batch_rep, weight, bias=None, *,
                           block_n=None, t_block=None, force_tiled=False):
    """batch_rep: (N, T, H); weight: (1, H) or (H,); bias: (1,). Returns (N, H)."""
    N, T, H = batch_rep.shape
    del bias  # softmax over T is shift-invariant -> the scalar bias is a no-op

    x = batch_rep                                        # native dtype, no HBM copy
    w = weight.reshape(1, 1, H).astype(jnp.float32)      # tiny
    out_dtype = x.dtype
    itemsize = jnp.dtype(x.dtype).itemsize
    per_row = T * H * itemsize                           # HBM bytes per batch element

    budget, vmem_limit = _budgets()
    nb_min = min(N, 8)
    use_tiled = bool(force_tiled) or (
        T >= 16 and (2 * nb_min * per_row > budget or per_row > 2 * 1024 * 1024))

    if not use_tiled:
        # ----------------- single pass over T ------------------------------
        if N <= 8:
            bn = N                                       # full-dim output block
        else:
            if block_n is None:
                cap_bn = _round_up(pl.cdiv(N, 4), 8)     # keep >= ~4 grid steps
                fit_bn = max(8, (budget // (2 * per_row)) // 8 * 8)
                bn = min(cap_bn, fit_bn)
            else:
                bn = int(block_n)
            bn = max(8, min(_round_up(bn, 8), (N // 8) * 8))

        grid = (pl.cdiv(N, bn),)
        return pl.pallas_call(
            _sap_single_pass_kernel,
            out_shape=jax.ShapeDtypeStruct((N, H), out_dtype),
            grid_spec=pltpu.PrefetchScalarGridSpec(
                num_scalar_prefetch=0,
                grid=grid,
                in_specs=[
                    pl.BlockSpec((1, 1, H), lambda n: (0, 0, 0)),        # W
                    pl.BlockSpec((bn, T, H), lambda n: (n, 0, 0)),       # x block
                ],
                out_specs=pl.BlockSpec((bn, H), lambda n: (n, 0)),
            ),
            compiler_params=pltpu.CompilerParams(
                dimension_semantics=("parallel",),
                vmem_limit_bytes=vmem_limit,
            ),
        )(w, x)

    # --------------------- T-tiled online softmax --------------------------
    if N <= 8:
        bn = N
    else:
        bn = 8 if block_n is None else max(
            8, min((int(block_n) // 8) * 8, (N // 8) * 8))

    if t_block is None:
        per_step = bn * H * itemsize                     # bytes per time step
        t_block = max(8, (budget // (2 * per_step)) // 8 * 8)
    t_block = max(8, (int(t_block) // 8) * 8)
    t_block = min(t_block, max(8, (T // 8) * 8))

    grid = (pl.cdiv(N, bn), pl.cdiv(T, t_block))
    kernel = functools.partial(_sap_tiled_kernel, seq_len=T, t_block=t_block)
    return pl.pallas_call(
        kernel,
        out_shape=jax.ShapeDtypeStruct((N, H), out_dtype),
        grid_spec=pltpu.PrefetchScalarGridSpec(
            num_scalar_prefetch=0,
            grid=grid,
            in_specs=[
                pl.BlockSpec((1, 1, H), lambda n, t: (0, 0, 0)),         # W
                pl.BlockSpec((bn, t_block, H), lambda n, t: (n, t, 0)),  # x tile
            ],
            out_specs=pl.BlockSpec((bn, H), lambda n, t: (n, 0)),
            scratch_shapes=[
                pltpu.VMEM((bn, 1), jnp.float32),    # running max  m
                pltpu.VMEM((bn, 1), jnp.float32),    # running sum  l
                pltpu.VMEM((bn, H), jnp.float32),    # running numerator
            ],
        ),
        compiler_params=pltpu.CompilerParams(
            dimension_semantics=("parallel", "arbitrary"),
            vmem_limit_bytes=vmem_limit,
        ),
    )(w, x)


# --------------------------------------------------------------------------
# Reference (pure elementwise f32, no matmul-precision ambiguity) and test
# --------------------------------------------------------------------------
def _reference(batch_rep, weight, bias):
    x = batch_rep.astype(jnp.float32)
    w = weight.astype(jnp.float32).reshape(1, 1, -1)
    logits = jnp.sum(x * w, axis=-1) + bias.astype(jnp.float32)[0]
    att = jax.nn.softmax(logits, axis=1)[..., None]
    return jnp.sum(x * att, axis=1)


if __name__ == "__main__":
    key = jax.random.PRNGKey(0)
    kx, kw, kb, kx2 = jax.random.split(key, 4)

    # ---- case 1: single-pass path (typical small voiceMOS shapes) ----------
    N, T, H = 2, 8, 32
    batch_rep = jax.random.normal(kx, (N, T, H), dtype=jnp.float32)
    # nn.Linear(H, 1): weight (1, H), bias (1,) -- deterministic synthetic init.
    weight = jax.random.normal(kw, (1, H), dtype=jnp.float32) * (1.0 / H) ** 0.5
    bias = jax.random.normal(kb, (1,), dtype=jnp.float32) * 0.1

    out = jax.block_until_ready(self_attention_pooling(batch_rep, weight, bias))
    ref = _reference(batch_rep, weight, bias)
    assert out.shape == (N, H)
    assert out.dtype == batch_rep.dtype
    assert jnp.allclose(out, ref, atol=1e-4, rtol=1e-4), float(
        jnp.max(jnp.abs(out - ref)))

    # ---- case 2: T-tiled online-softmax path (forced; ragged T tail) -------
    N2, T2, H2 = 4, 60, 32
    batch_rep2 = jax.random.normal(kx2, (N2, T2, H2), dtype=jnp.float32)
    out2 = jax.block_until_ready(
        self_attention_pooling(batch_rep2, weight, bias,
                               force_tiled=True, t_block=16))
    ref2 = _reference(batch_rep2, weight, bias)
    assert out2.shape == (N2, H2)
    assert jnp.allclose(out2, ref2, atol=1e-4, rtol=1e-4), float(
        jnp.max(jnp.abs(out2 - ref2)))

    print("KERNEL_OK")
</pallas_src>

<mosaic_0001>
module attributes {stable_mosaic.version = 11 : i64} {
  func.func @_sap_single_pass_kernel(%arg0: i32, %arg1: memref<1x1x32xf32, #tpu.memory_space<vmem>>, %arg2: memref<2x8x32xf32, #tpu.memory_space<vmem>>, %arg3: memref<2x32xf32, #tpu.memory_space<vmem>>) attributes {dimension_semantics = [#tpu.dimension_semantics<parallel>], iteration_bounds = array<i64: 1>, scalar_prefetch = 0 : i64, scratch_operands = 0 : i64, tpu.core_type = #tpu.core_type<tc>, window_params = [{pipeline_mode = #tpu.pipeline_mode<synchronous>, transform_indices = @transform_0, window_bounds = array<i64: 1, 1, 32>}, {transform_indices = @transform_1, window_bounds = array<i64: 2, 8, 32>}, {transform_indices = @transform_2, window_bounds = array<i64: 2, 32>}]} {
    %c0 = arith.constant 0 : index
    %c0_0 = arith.constant 0 : index
    %c0_1 = arith.constant 0 : index
    %0 = vector.load %arg2[%c0, %c0_0, %c0_1] : memref<2x8x32xf32, #tpu.memory_space<vmem>>, vector<2x8x32xf32>
    %c0_2 = arith.constant 0 : index
    %c0_3 = arith.constant 0 : index
    %c0_4 = arith.constant 0 : index
    %1 = vector.load %arg1[%c0_2, %c0_3, %c0_4] : memref<1x1x32xf32, #tpu.memory_space<vmem>>, vector<1x1x32xf32>
    %2 = vector.broadcast %1 : vector<1x1x32xf32> to vector<2x8x32xf32>
    %3 = arith.mulf %0, %2 : vector<2x8x32xf32>
    %cst = arith.constant dense<0.000000e+00> : vector<2x8xf32>
    %4 = vector.multi_reduction <add>, %3, %cst [2] : vector<2x8x32xf32> to vector<2x8xf32>
    %cst_5 = arith.constant dense<0xFF800000> : vector<2xf32>
    %5 = vector.multi_reduction <maximumf>, %4, %cst_5 [1] : vector<2x8xf32> to vector<2xf32>
    %6 = vector.shape_cast %5 : vector<2xf32> to vector<2x1xf32>
    %7 = vector.broadcast %6 : vector<2x1xf32> to vector<2x8xf32>
    %8 = arith.subf %4, %7 : vector<2x8xf32>
    %9 = math.exp %8 : vector<2x8xf32>
    %cst_6 = arith.constant dense<0.000000e+00> : vector<2xf32>
    %10 = vector.multi_reduction <add>, %9, %cst_6 [1] : vector<2x8xf32> to vector<2xf32>
    %11 = vector.shape_cast %10 : vector<2xf32> to vector<2x1xf32>
    %12 = vector.shape_cast %9 : vector<2x8xf32> to vector<2x1x8xf32>
    %cst_7 = arith.constant dense<0.000000e+00> : vector<2x1x32xf32>
    %13 = tpu.matmul %12, %0, %cst_7 {dimension_numbers = #tpu.dot_dimension_numbers<[2], [1], [1], [2], [0, 0, 0, 1, 1, 2], [0], [0]>, precision = #tpu.contract_precision<fp32>} : vector<2x1x8xf32>, vector<2x8x32xf32>, vector<2x1x32xf32> -> vector<2x1x32xf32>
    %14 = vector.shape_cast %13 : vector<2x1x32xf32> to vector<2x32xf32>
    %15 = vector.broadcast %11 : vector<2x1xf32> to vector<2x32xf32>
    %16 = arith.divf %14, %15 : vector<2x32xf32>
    %c0_8 = arith.constant 0 : index
    %c0_9 = arith.constant 0 : index
    %17 = vector.load %arg3[%c0_8, %c0_9] : memref<2x32xf32, #tpu.memory_space<vmem>>, vector<2x32xf32>
    tpu.vector_store %arg3[%c0_8, %c0_9], %16 {strides = array<i32>} : memref<2x32xf32, #tpu.memory_space<vmem>>, vector<2x32xf32>,
    return
  }
  func.func @transform_0(%arg0: i32) -> (i32, i32, i32) {
    %c0_i32 = arith.constant 0 : i32
    %c0_i32_0 = arith.constant 0 : i32
    %c0_i32_1 = arith.constant 0 : i32
    %c0_i32_2 = arith.constant 0 : i32
    return %c0_i32, %c0_i32_0, %c0_i32_1 : i32, i32, i32
  }
  func.func @transform_1(%arg0: i32) -> (i32, i32, i32) {
    %c0_i32 = arith.constant 0 : i32
    %c0_i32_0 = arith.constant 0 : i32
    %c0_i32_1 = arith.constant 0 : i32
    return %arg0, %c0_i32, %c0_i32_0 : i32, i32, i32
  }
  func.func @transform_2(%arg0: i32) -> (i32, i32) {
    %c0_i32 = arith.constant 0 : i32
    %c0_i32_0 = arith.constant 0 : i32
    return %arg0, %c0_i32 : i32, i32
  }
}

</mosaic_0001>

<bundles_post_ra>
// kernel: tpu_custom_call.1
= control target key start
LH: loop header
LB: loop body
LE: loop exit
PB: predicated region body
PF: predicated region fallthrough
CT: control target
= control target key end

     0   :  { %7 = vsyncpa [#allocation3], 0  ;;  %s1355_s0 = inlined_call_operand.hbm [shape: f32[1,1,32], index: 0, kind: input, shape index: {}]   ;;  %s1356_s1 = inlined_call_operand.hbm [shape: f32[2,8,32], index: 1, kind: input, shape index: {}]   ;;  %s1357_s2 = inlined_call_operand.hbm [shape: f32[2,32], index: 2, kind: output, shape index: {}]  }
   0x1   :  { %8 = vsyncpa [#allocation6], 0 }
   0x2   :  { %9 = vsyncpa [#allocation4], 0  ;;  %s1236_s9 = smov [#allocation2]   ;;  %s1237_s11 = smov [#allocation5]  }
   0x3   :  { %s16_s10 = sshll.u32 %s1236_s9, 4  ;;  %s25_s12 = sshll.u32 %s1237_s11, 4  ;;  %s17_s10 = int_to_ptr.vmem [resolvable:$true] %s16_s10  ;;  %s1259_s12 = int_to_ptr.vmem [resolvable:$true] %s25_s12 }
   0x4   :  { %s1164_s15 = scalar_lea.hbm %s1355_s0, 16 }
   0x5   :  { %p1165_p0 = scmp.ne.s32.totalorder %s1355_s0, %s1164_s15  ;;  %p1168_p1 = scmp.lt.u32.totalorder %s1164_s15, %s1355_s0 }
   0x7   :  { %p1170_p2 = pnand %p1168_p1, %p1165_p0 }
   0x9   :  { %1173 = shalt.err (!%p1170_p2)
}
   0xa   :  { %s1174_s20 = scalar_lea.vmem %s17_s10, 16  ;;  %s1178_s21 = scalar_lea.vmem %s17_s10, 32 }
   0xb   :  { %p1175_p3 = scmp.ne.s32.totalorder %s17_s10, %s1174_s20  ;;  %p1179_p4 = scmp.lt.s32.totalorder %s17_s10, %s17_s10 }
   0xc   :  { %p1180_p5 = scmp.lt.s32.totalorder %s1178_s21, %s1174_s20 }
   0xe   :  { %p1181_p6 = por %p1180_p5, %p1179_p4 }
  0x10   :  { %p1182_p7 = pnand %p1181_p6, %p1175_p3 }
  0x12   :  { %1185 = shalt.err (!%p1182_p7)
}
  0x13   :  { %19 = dma.hbm_to_vmem [thread:$0]  %s1355_s0, 16, %s17_s10, [#allocation3]  }
  0x14   :  { %s1186_s26 = scalar_lea.hbm %s1356_s1, 256 }
  0x15   :  { %p1187_p8 = scmp.ne.s32.totalorder %s1356_s1, %s1186_s26  ;;  %p1190_p9 = scmp.lt.u32.totalorder %s1186_s26, %s1356_s1 }
  0x17   :  { %p1192_p10 = pnand %p1190_p9, %p1187_p8 }
  0x19   :  { %1195 = shalt.err (!%p1192_p10)
}
  0x1a   :  { %s1196_s3 = scalar_lea.vmem %s1259_s12, 256  ;;  %p1201_p12 = scmp.lt.s32.totalorder %s1259_s12, %s1259_s12 }
  0x1b   :  { %p1197_p11 = scmp.ne.s32.totalorder %s1259_s12, %s1196_s3  ;;  %p1202_p13 = scmp.lt.s32.totalorder %s1196_s3, %s1196_s3 }
  0x1d   :  { %p1203_p0 = por %p1202_p13, %p1201_p12 }
  0x1f   :  { %p1204_p1 = pnand %p1203_p0, %p1197_p11 }
  0x21   :  { %1207 = shalt.err (!%p1204_p1)
}
  0x22   :  { %s1238_s0 = smov 128   ;;  %s1239_s4 = smov 8  }
  0x23   :  { %31 = dma.hbm_to_vmem [thread:$0]  %s1356_s1, 256, %s1259_s12, [#allocation6], %s1238_s0, %s1238_s0, %s1239_s4  }
  0x24   :  { %1230 = dma.done.wait [#allocation3], 16  }
  0x25   :  { %1231 = vsyncadd [#allocation3], 4294967280 }
  0x26   :  { %1232 = dma.done.wait [#allocation6], 256  }
  0x27   :  { %1233 = vsyncadd [#allocation6], 4294967040  ;;  %v38_v0 = vld [vmem:[#allocation5] sm:$0xff]  ;;  %v1041_v1 = vld [vmem:[#allocation2] ss:$0 sm:$0xff]  ;;  %vm49_vm0 = vcmask 261120   ;;  %v58_v7 = vlaneseq }
  0x28   :  { %v39_v2 = vld [vmem:[#allocation5 + $0x8] sm:$0xff]  ;;  %v47_v3 = vmul.f32 %v1041_v1, %v38_v0  ;;  %vm68_vm1 = vcmask 1041409   ;;  %vm71_vm2 = vcmask 58368   ;;  %v1240_v17 = vmov 0   ;;  %s1243_s1 = smov [#allocation7]  }
  0x29   :  { %v48_v4 = vmul.f32 %v1041_v1, %v39_v2  ;;  %v59_v8 = vand.u32 127, %v58_v7  ;;  %v61_v9 = vshrl.u32 %v58_v7, 7  ;;  %1155 = vset.pattern.permute.xlu0 %v1240_v17  ;;  %1154 = vset.pattern.permute.xlu1 %v1240_v17  ;;  %v1292_v29 = vand.u32 4294901760, %v38_v0  ;;  %s1031_s7 = sshll.u32 %s1243_s1, 4  ;;  %s1032_s7 = int_to_ptr.vmem [resolvable:$true] %s1031_s7 }
  0x2a   :  { %v50_v5 = vsel %vm49_vm0, %v47_v3, 0.0  ;;  %v1294_v30 = vand.u32 4294901760, %v39_v2  ;;  %v1241_v31 = vmov 0.0   ;;  %vm1242_vm3 = vmmov 0   ;;  %s1208_s8 = scalar_lea.vmem %s1032_s7, 32  ;;  %p1213_p3 = scmp.lt.s32.totalorder %s1032_s7, %s1032_s7 }
  0x2b   :  { %51 = vadd.xlane.f32.xlu0 %v50_v5  ;;  %v53_v6 = vsel %vm49_vm0, %v48_v4, 0.0  ;;  %v62_v11 = vsub.s32 %v59_v8, %v61_v9  ;;  %v78_v18 = vsub.s32 0, %v61_v9  ;;  %v82_v19 = vsub.s32 1, %v61_v9  ;;  %1096 = vmatprep.subr.mxu1 %v1241_v31  ;;  %p1209_p2 = scmp.ne.s32.totalorder %s1032_s7, %s1208_s8  ;;  %p1214_p4 = scmp.lt.s32.totalorder %s1208_s8, %s1208_s8 }
  0x2c   :  { %1066 = vmatprep.subr.mxu0 %v1241_v31  ;;  %1097 = vmatpush3.msra.mxu1 %v1294_v30  ;;  %v194_v32 = vsub.f32 %v38_v0, %v1292_v29  ;;  %v642_v33 = vsub.f32 %v39_v2, %v1294_v30  ;;  %vm113_vm4 = vcmask 64512   ;;  %vm1023_vm5 = vcmask 254976  }
  0x2d   :  { %1067 = vmatpush3.msra.mxu0 %v1292_v29  ;;  %1068 = vmatprep.mubr.msk.f32.mxu0 %vm1242_vm3, %v1241_v31  ;;  %p1215_p5 = por %p1214_p4, %p1213_p3 }
  0x2e   :  { %1098 = vmatprep.mubr.msk.f32.mxu1 %vm1242_vm3, %v1241_v31  ;;  %1101 = vmatprep.subr.mxu1 %v1241_v31  ;;  %v195_v39 = vand.u32 4294901760, %v194_v32  ;;  %v643_v43 = vand.u32 4294901760, %v642_v33 }
  0x2f   :  { %54 = vadd.xlane.f32.xlu0 %v53_v6  ;;  %1071 = vmatprep.subr.mxu0 %v1241_v31  ;;  %p1216_p6 = pnand %p1215_p5, %p1209_p2 }
  0x30   :  { %v196_v48 = vsub.f32 %v194_v32, %v195_v39  ;;  %v644_v50 = vsub.f32 %v642_v33, %v643_v43 }
  0x32   :  { %v197_v54 = vand.u32 4294901760, %v196_v48  ;;  %v645_v56 = vand.u32 4294901760, %v644_v50 }
  0xb8   :  { %v52_v10 = vpop.xlane.xlu0 %51 }
  0xb9   :  { %v63_v13 = vrot.slane %v52_v10, %v62_v11 }
  0xbc   :  { %v55_v12 = vpop.xlane.xlu0 %54 }
  0xbd   :  { %v67_v14 = vrot.slane %v55_v12, %v62_v11 }
  0xbf   :  { %v69_v15 = vsel %vm68_vm1, %v67_v14, %v63_v13 }
  0xc0   :  { %v72_v16 = vsel %vm71_vm2, %v69_v15, -inf }
  0xc1   :  { %73 = vmax.xlane.f32.xlu1 %v72_v16 }
 0x14e   :  { %v74_v20 = vpop.xlane.xlu1 %73 }
 0x14f   :  { %v79_v21 = vrot.slane %v74_v20, %v78_v18  ;;  %v83_v22 = vrot.slane %v74_v20, %v82_v19 }
 0x151   :  { %v86_v23 = vsub.f32 %v52_v10, %v79_v21  ;;  %v87_v24 = vsub.f32 %v55_v12, %v83_v22 }
 0x153   :  { %v88_v25 = vmul.f32 1.442695, %v86_v23  ;;  %v90_v26 = vmul.f32 1.442695, %v87_v24 }
 0x155   :  { %1156 = vpow2.f32 %v88_v25 }
 0x156   :  { %1158 = vpow2.f32 %v90_v26 }
 0x15f   :  { %v1157_v27 = vpop.eup %1156 }
 0x160   :  { %v1159_v28 = vpop.eup %1158  ;;  %95 = vperm.xlu0 %1155, %v1157_v27  }
 0x161   :  { %98 = vperm.xlu1 %1154, %v1159_v28  }
 0x1df   :  { %v96_v34 = vpop.permute.xlu0 %95 }
 0x1e0   :  { %v99_v35 = vpop.permute.xlu1 %98  ;;  %v103_v36 = vrot.slane %v96_v34, %v62_v11 }
 0x1e1   :  { %v107_v37 = vrot.slane %v99_v35, %v62_v11 }
 0x1e2   :  { %v114_v38 = vsel %vm113_vm4, %v103_v36, 0 }
 0x1e3   :  { %v562_v40 = vsel %vm113_vm4, %v107_v37, 0  ;;  %v182_v41 = vand.u32 4294901760, %v114_v38  ;;  %v108_v42 = vsel %vm68_vm1, %v107_v37, %v103_v36 }
 0x1e4   :  { %v630_v44 = vand.u32 4294901760, %v562_v40  ;;  %v110_v45 = vsel %vm71_vm2, %v108_v42, 0.0 }
 0x1e5   :  { %v183_v46 = vsub.f32 %v114_v38, %v182_v41  ;;  %111 = vadd.xlane.f32.xlu1 %v110_v45 }
 0x1e6   :  { %v631_v47 = vsub.f32 %v562_v40, %v630_v44 }
 0x1e7   :  { %v184_v49 = vand.u32 4294901760, %v183_v46 }
 0x1e8   :  { %v632_v51 = vand.u32 4294901760, %v631_v47 }
 0x1e9   :  { %v185_v52 = vsub.f32 %v183_v46, %v184_v49 }
 0x1ea   :  { %v633_v53 = vsub.f32 %v631_v47, %v632_v51 }
 0x1eb   :  { %v186_v55 = vand.u32 4294901760, %v185_v52 }
 0x1ec   :  { %v634_v57 = vand.u32 4294901760, %v633_v53 }
 0x1ed   :  { %1069 = vmatmul.mubr.f32.vlgmr.msra.gmra.mrb[0].mxu0 %v186_v55 }
 0x1ee   :  { %1099 = vmatmul.mubr.f32.vlgmr.msra.gmra.mrb[0].mxu1 %v634_v57  ;;  %1072 = vmatpush3.msra.mxu0 %v197_v54 }
 0x1ef   :  { %1102 = vmatpush3.msra.mxu1 %v645_v56  ;;  %1073 = vmatprep.mubr.msk.f32.mxu0 %vm1242_vm3, %v1241_v31 }
 0x1f0   :  { %1103 = vmatprep.mubr.msk.f32.mxu1 %vm1242_vm3, %v1241_v31  ;;  %1106 = vmatprep.subr.mxu1 %v1241_v31 }
 0x1f1   :  { %1076 = vmatprep.subr.mxu0 %v1241_v31 }
 0x1f5   :  { %1074 = vmatmul.mubr.f32.vlgmr.msra.gmra.mrb[0].mxu0 %v182_v41 }
 0x1f6   :  { %1104 = vmatmul.mubr.f32.vlgmr.msra.gmra.mrb[0].mxu1 %v630_v44  ;;  %1077 = vmatpush3.msra.mxu0 %v194_v32 }
 0x1f7   :  { %1107 = vmatpush3.msra.mxu1 %v642_v33  ;;  %1078 = vmatprep.mubr.msk.f32.mxu0 %vm1242_vm3, %v1241_v31 }
 0x1f8   :  { %1108 = vmatprep.mubr.msk.f32.mxu1 %vm1242_vm3, %v1241_v31  ;;  %1111 = vmatprep.subr.mxu1 %v1241_v31 }
 0x1f9   :  { %1081 = vmatprep.subr.mxu0 %v1241_v31 }
 0x1fd   :  { %1079 = vmatmul.mubr.f32.vlgmr.msra.gmra.mrb[0].mxu0 %v183_v46 }
 0x1fe   :  { %1109 = vmatmul.mubr.f32.vlgmr.msra.gmra.mrb[0].mxu1 %v631_v47  ;;  %1082 = vmatpush3.msra.mxu0 %v1292_v29 }
 0x1ff   :  { %1112 = vmatpush3.msra.mxu1 %v1294_v30  ;;  %1083 = vmatprep.mubr.msk.f32.mxu0 %vm1242_vm3, %v1241_v31 }
 0x200   :  { %1113 = vmatprep.mubr.msk.f32.mxu1 %vm1242_vm3, %v1241_v31  ;;  %1116 = vmatprep.subr.mxu1 %v1241_v31 }
 0x201   :  { %1086 = vmatprep.subr.mxu0 %v1241_v31 }
 0x205   :  { %1084 = vmatmul.mubr.f32.vlgmr.msra.gmra.mrb[0].mxu0 %v184_v49 }
 0x206   :  { %1114 = vmatmul.mubr.f32.vlgmr.msra.gmra.mrb[0].mxu1 %v632_v51  ;;  %1087 = vmatpush3.msra.mxu0 %v195_v39 }
 0x207   :  { %1117 = vmatpush3.msra.mxu1 %v643_v43  ;;  %1088 = vmatprep.mubr.msk.f32.mxu0 %vm1242_vm3, %v1241_v31 }
 0x208   :  { %1118 = vmatprep.mubr.msk.f32.mxu1 %vm1242_vm3, %v1241_v31  ;;  %1121 = vmatprep.subr.mxu1 %v1241_v31 }
 0x209   :  { %1091 = vmatprep.subr.mxu0 %v1241_v31 }
 0x20d   :  { %1089 = vmatmul.mubr.f32.vlgmr.msra.gmra.mrb[0].mxu0 %v182_v41 }
 0x20e   :  { %1119 = vmatmul.mubr.f32.vlgmr.msra.gmra.mrb[0].mxu1 %v630_v44  ;;  %1092 = vmatpush3.msra.mxu0 %v1292_v29 }
 0x20f   :  { %1122 = vmatpush3.msra.mxu1 %v1294_v30  ;;  %1093 = vmatprep.mubr.msk.f32.mxu0 %vm1242_vm3, %v1241_v31 }
 0x210   :  { %1123 = vmatprep.mubr.msk.f32.mxu1 %vm1242_vm3, %v1241_v31 }
 0x215   :  { %1094 = vmatmul.mubr.f32.vlgmr.msra.gmra.mrb[0].mxu0 %v182_v41 }
 0x216   :  { %1124 = vmatmul.mubr.f32.vlgmr.msra.gmra.mrb[0].mxu1 %v630_v44 }
 0x272   :  { %v112_v58 = vpop.xlane.xlu1 %111 }
 0x273   :  { %v1011_v59 = vrot.slane %v112_v58, 1 }
 0x275   :  { %1160 = vrcp.f32 %v1011_v59 }
 0x276   :  { %1162 = vrcp.f32 %v112_v58 }
 0x27f   :  { %v1161_v61 = vpop.eup %1160 }
 0x280   :  { %v1163_v2 = vpop.eup %1162 }
 0x2e8   :  { %v558_v60 = vpop.f32.mrb[0].mxu0 }
 0x2e9   :  { %v1006_v62 = vpop.f32.mrb[0].mxu1  ;;  %v1095_v63 = vpop.f32.mrb[1].mxu0  ;;  %v1015_v3 = vmul.f32 %v1163_v2, %v558_v60 }
 0x2ea   :  { %v1017_v0 = vmul.f32 %v1161_v61, %v1006_v62  ;;  %v1125_v1 = vpop.f32.mrb[1].mxu1 }
 0x2ec   :  { %v1020_v4 = vrot.slane %v1017_v0, 7 }
 0x2ee   :  { %v1021_v5 = vsel %vm68_vm1, %v1020_v4, %v1015_v3 }
 0x2ef   :  { %1024 = vst.msk [vmem:[#allocation7] sm:$0x3] %vm1023_vm5, %v1021_v5 }
 0x2f0   :  { %1219 = shalt.err (!%p1216_p6)
}
 0x2f1   :  { %s1220_s11 = scalar_lea.hbm %s1357_s2, 32 }
 0x2f2   :  { %p1221_p7 = scmp.ne.s32.totalorder %s1357_s2, %s1220_s11  ;;  %p1224_p8 = scmp.lt.u32.totalorder %s1220_s11, %s1357_s2 }
 0x2f4   :  { %p1226_p9 = pnand %p1224_p8, %p1221_p7 }
 0x2f6   :  { %1229 = shalt.err (!%p1226_p9)
}
 0x2f7   :  { %1034 = dma.vmem_to_hbm [thread:$0]  %s1032_s7, 32, %s1357_s2, [#allocation4]  }
 0x2f8   :  { %1234 = dma.done.wait [#allocation4], 32  }
 0x2f9   :  { %1235 = vsyncadd [#allocation4], 4294967264 }
 0x2fa   :  { %1038 = vsyncpa [#allocation3], 1 }
 0x2fb   :  { %1039 = vsyncpa [#allocation6], 1 }
 0x2fc   :  { %1040 = vsyncpa [#allocation4], 1 }

</bundles_post_ra>
